<compile_context>
chip_gen: v6e
topology: v6e:2x2x1
jax: 0.10.0
libtpu: 0.0.40
codegen_flags: <defaults>
</compile_context>

<pallas_src>
import jax
import jax.numpy as jnp
from jax.experimental import pallas as pl
from jax.experimental.pallas import tpu as pltpu


def _residual_block_kernel(x_ref, wt_ref, b_ref, o_ref):
    # x_ref: (TM, C), wt_ref: (C_in, C_out) = weight.T, b_ref: (1, C)
    x = x_ref[...]
    # y = x @ W.T + b  (nn.Linear semantics); weight already transposed in
    # the wrapper so this is a straight MXU matmul with no in-kernel transpose.
    y = jnp.dot(x, wt_ref[...], preferred_element_type=jnp.float32)
    y = y + b_ref[...].astype(jnp.float32)
    # Fused epilogue: ReLU + residual add (f32), cast to output dtype.
    o_ref[...] = (jnp.maximum(y, 0.0) + x.astype(jnp.float32)).astype(o_ref.dtype)


def _pick_tm(M, C, itemsize, budget_bytes=12 * 1024 * 1024):
    """Largest row-tile that fits the VMEM budget (double-buffered x/out,
    double-buffered-but-resident weight + bias), multiple of 8, capped at
    1024 to keep per-step DMA latency reasonable."""
    resident = 2 * C * C * itemsize + 2 * C * itemsize  # weight + bias bufs
    avail = max(budget_bytes - resident, 0)
    per_row = 4 * C * itemsize  # 2 input buffers + 2 output buffers per row
    tm = avail // per_row if per_row > 0 else M
    tm = int(min(tm, 1024))
    tm = (tm // 8) * 8
    tm = max(tm, 8)
    if tm >= M:
        return M  # single full-extent block (satisfies full-dim rule)
    return tm


def residual_block_pallas(x, weight, bias):
    """x: (..., C); weight: (C, C) (PyTorch [out,in]); bias: (C,)
    Returns relu(x @ W.T + b) + x with the same shape/dtype as x."""
    orig_shape = x.shape
    C = orig_shape[-1]
    x2d = x.reshape(-1, C)
    M = x2d.shape[0]

    # Pre-transpose the weight once in the wrapper (removes in-kernel w.T).
    w_t = weight.T  # (C_in, C_out)
    bias2d = bias.reshape(1, C)

    itemsize = jnp.dtype(x.dtype).itemsize
    TM = _pick_tm(M, C, itemsize)

    # Pad rows so M is a multiple of TM (padded rows are discarded after).
    M_pad = pl.cdiv(M, TM) * TM
    if M_pad != M:
        x2d = jnp.pad(x2d, ((0, M_pad - M), (0, 0)))

    grid = (M_pad // TM,)

    out = pl.pallas_call(
        _residual_block_kernel,
        out_shape=jax.ShapeDtypeStruct((M_pad, C), x.dtype),
        grid_spec=pl.GridSpec(
            grid=grid,
            in_specs=[
                pl.BlockSpec((TM, C), lambda i: (i, 0)),   # x tile (pipelined)
                pl.BlockSpec((C, C), lambda i: (0, 0)),    # weight.T (resident)
                pl.BlockSpec((1, C), lambda i: (0, 0)),    # bias (resident)
            ],
            out_specs=pl.BlockSpec((TM, C), lambda i: (i, 0)),
        ),
        compiler_params=pltpu.CompilerParams(
            dimension_semantics=("parallel",),  # megacore-shardable on v7x
        ),
    )(x2d, w_t, bias2d)

    if M_pad != M:
        out = out[:M]
    return out.reshape(orig_shape)


if __name__ == "__main__":
    # Shapes implied by the module: channels on the last axis.
    batch, seq, n_channels = 2, 8, 32

    key = jax.random.PRNGKey(0)
    kx, kw, kb = jax.random.split(key, 3)

    x = jax.random.normal(kx, (batch, seq, n_channels), dtype=jnp.float32)
    # Deterministic synthetic parameters (mirror nn.Linear param shapes).
    weight = jax.random.normal(kw, (n_channels, n_channels), dtype=jnp.float32) * 0.1
    bias = jax.random.normal(kb, (n_channels,), dtype=jnp.float32) * 0.1

    out = residual_block_pallas(x, weight, bias)
    out = jax.block_until_ready(out)

    # Pure-JAX reference of the PyTorch forward.
    ref = jnp.maximum(x @ weight.T + bias, 0.0) + x
    assert out.shape == x.shape
    assert jnp.allclose(out, ref, atol=1e-5, rtol=1e-5), "mismatch vs reference"

    print("KERNEL_OK")
</pallas_src>

<mosaic_0001>
module attributes {stable_mosaic.version = 11 : i64} {
  func.func @_residual_block_kernel(%arg0: i32, %arg1: memref<16x32xf32, #tpu.memory_space<vmem>>, %arg2: memref<32x32xf32, #tpu.memory_space<vmem>>, %arg3: memref<1x32xf32, #tpu.memory_space<vmem>>, %arg4: memref<16x32xf32, #tpu.memory_space<vmem>>) attributes {dimension_semantics = [#tpu.dimension_semantics<parallel>], iteration_bounds = array<i64: 1>, scalar_prefetch = 0 : i64, scratch_operands = 0 : i64, tpu.core_type = #tpu.core_type<tc>, window_params = [{transform_indices = @transform_0, window_bounds = array<i64: 16, 32>}, {pipeline_mode = #tpu.pipeline_mode<synchronous>, transform_indices = @transform_1, window_bounds = array<i64: 32, 32>}, {pipeline_mode = #tpu.pipeline_mode<synchronous>, transform_indices = @transform_2, window_bounds = array<i64: 1, 32>}, {transform_indices = @transform_3, window_bounds = array<i64: 16, 32>}]} {
    %c0 = arith.constant 0 : index
    %c0_0 = arith.constant 0 : index
    %0 = vector.load %arg1[%c0, %c0_0] : memref<16x32xf32, #tpu.memory_space<vmem>>, vector<16x32xf32>
    %c0_1 = arith.constant 0 : index
    %c0_2 = arith.constant 0 : index
    %1 = vector.load %arg2[%c0_1, %c0_2] : memref<32x32xf32, #tpu.memory_space<vmem>>, vector<32x32xf32>
    %cst = arith.constant dense<0.000000e+00> : vector<16x32xf32>
    %2 = tpu.matmul %0, %1, %cst {dimension_numbers = #tpu.dot_dimension_numbers<[1], [0], [0], [1], [0, 0, 1, 1], [], []>} : vector<16x32xf32>, vector<32x32xf32>, vector<16x32xf32> -> vector<16x32xf32>
    %c0_3 = arith.constant 0 : index
    %c0_4 = arith.constant 0 : index
    %3 = vector.load %arg3[%c0_3, %c0_4] : memref<1x32xf32, #tpu.memory_space<vmem>>, vector<1x32xf32>
    %4 = vector.broadcast %3 : vector<1x32xf32> to vector<16x32xf32>
    %5 = arith.addf %2, %4 : vector<16x32xf32>
    %cst_5 = arith.constant 0.000000e+00 : f32
    %6 = vector.broadcast %cst_5 : f32 to vector<16x32xf32>
    %7 = arith.maximumf %5, %6 : vector<16x32xf32>
    %8 = arith.addf %7, %0 : vector<16x32xf32>
    %c0_6 = arith.constant 0 : index
    %c0_7 = arith.constant 0 : index
    %9 = vector.load %arg4[%c0_6, %c0_7] : memref<16x32xf32, #tpu.memory_space<vmem>>, vector<16x32xf32>
    tpu.vector_store %arg4[%c0_6, %c0_7], %8 {strides = array<i32>} : memref<16x32xf32, #tpu.memory_space<vmem>>, vector<16x32xf32>,
    return
  }
  func.func @transform_0(%arg0: i32) -> (i32, i32) {
    %c0_i32 = arith.constant 0 : i32
    %c0_i32_0 = arith.constant 0 : i32
    return %arg0, %c0_i32 : i32, i32
  }
  func.func @transform_1(%arg0: i32) -> (i32, i32) {
    %c0_i32 = arith.constant 0 : i32
    %c0_i32_0 = arith.constant 0 : i32
    %c0_i32_1 = arith.constant 0 : i32
    return %c0_i32, %c0_i32_0 : i32, i32
  }
  func.func @transform_2(%arg0: i32) -> (i32, i32) {
    %c0_i32 = arith.constant 0 : i32
    %c0_i32_0 = arith.constant 0 : i32
    %c0_i32_1 = arith.constant 0 : i32
    return %c0_i32, %c0_i32_0 : i32, i32
  }
  func.func @transform_3(%arg0: i32) -> (i32, i32) {
    %c0_i32 = arith.constant 0 : i32
    %c0_i32_0 = arith.constant 0 : i32
    return %arg0, %c0_i32 : i32, i32
  }
}

</mosaic_0001>

<bundles_post_ra>
// kernel: tpu_custom_call.1
= control target key start
LH: loop header
LB: loop body
LE: loop exit
PB: predicated region body
PF: predicated region fallthrough
CT: control target
= control target key end

     0   :  { %8 = vsyncpa [#allocation3], 0  ;;  %s303_s0 = inlined_call_operand.hbm [shape: f32[16,32], index: 0, kind: input, shape index: {}]   ;;  %s304_s1 = inlined_call_operand.hbm [shape: f32[32,32], index: 1, kind: input, shape index: {}]   ;;  %s305_s2 = inlined_call_operand.vmem [shape: f32[1,32], index: 2, kind: input, shape index: {}]   ;;  %s306_s3 = inlined_call_operand.hbm [shape: f32[16,32], index: 3, kind: output, shape index: {}]  }
   0x1   :  { %9 = vsyncpa [#allocation6], 0 }
   0x2   :  { %10 = vsyncpa [#allocation4], 0  ;;  %s253_s12 = smov [#allocation2]  }
   0x3   :  { %s16_s13 = sshll.u32 %s253_s12, 4  ;;  %s17_s13 = int_to_ptr.vmem [resolvable:$true] %s16_s13 }
   0x4   :  { %s195_s14 = scalar_lea.vmem %s17_s13, 256  ;;  %p200_p1 = scmp.lt.s32.totalorder %s17_s13, %s17_s13 }
   0x5   :  { %p196_p0 = scmp.ne.s32.totalorder %s17_s13, %s195_s14  ;;  %p201_p2 = scmp.lt.s32.totalorder %s195_s14, %s195_s14 }
   0x7   :  { %p202_p3 = por %p201_p2, %p200_p1 }
   0x9   :  { %p203_p4 = pnand %p202_p3, %p196_p0 }
   0xb   :  { %206 = shalt.err (!%p203_p4)
}
   0xc   :  { %s254_s15 = smov 128   ;;  %s255_s16 = smov 8  }
   0xd   :  { %22 = dma.hbm_to_vmem [thread:$0]  %s303_s0, 256, %s17_s13, [#allocation3], %s254_s15, %s254_s15, %s255_s16  }
   0xe   :  { %s256_s19 = smov [#allocation5]  }
   0xf   :  { %s28_s20 = sshll.u32 %s256_s19, 4  ;;  %s29_s20 = int_to_ptr.vmem [resolvable:$true] %s28_s20 }
  0x10   :  { %s215_s21 = scalar_lea.vmem %s29_s20, 512  ;;  %p220_p6 = scmp.lt.s32.totalorder %s29_s20, %s29_s20 }
  0x11   :  { %p216_p5 = scmp.ne.s32.totalorder %s29_s20, %s215_s21  ;;  %p221_p7 = scmp.lt.s32.totalorder %s215_s21, %s215_s21 }
  0x13   :  { %p222_p8 = por %p221_p7, %p220_p6 }
  0x15   :  { %p223_p9 = pnand %p222_p8, %p216_p5 }
  0x17   :  { %226 = shalt.err (!%p223_p9)
}
  0x18   :  { %34 = dma.hbm_to_vmem [thread:$0]  %s304_s1, 512, %s29_s20, [#allocation6], %s254_s15, %s254_s15, %s255_s16  }
  0x19   :  { %247 = dma.done.wait [#allocation3], 256  }
  0x1a   :  { %248 = vsyncadd [#allocation3], 4294967040 }
  0x1b   :  { %249 = dma.done.wait [#allocation6], 512  }
  0x1c   :  { %250 = vsyncadd [#allocation6], 4294966784  ;;  %vm56_vm0 = vcmask 261120   ;;  %v48_v0 = vld [vmem:[#allocation5 + $0x18] sm:$0xff]  ;;  %v47_v1 = vld [vmem:[#allocation5 + $0x10] sm:$0xff]  ;;  %s257_s24 = smov [#allocation7]  }
  0x1d   :  { %171 = vmatprep.subr.mxu0 %v48_v0  ;;  %v43_v2 = vld [vmem:[#allocation2] sm:$0xff]  ;;  %v46_v3 = vld [vmem:[#allocation5 + $0x8] sm:$0xff]  ;;  %v45_v4 = vld [vmem:[#allocation5] sm:$0xff]  ;;  %s149_s25 = sshll.u32 %s257_s24, 4  ;;  %s150_s25 = int_to_ptr.vmem [resolvable:$true] %s149_s25 }
  0x1e   :  { %172 = vmatpush3.msra.mxu0 %v48_v0  ;;  %179 = vmatprep.mubr.msk.f32.mxu0 %vm56_vm0, %v43_v2  ;;  %v44_v5 = vld [vmem:[#allocation2 + $0x8] sm:$0xff]  ;;  %v162_v6 = vld [vmem:[%s305_s2] ss:$0 sm:$0xff]  ;;  %s227_s26 = scalar_lea.vmem %s150_s25, 256  ;;  %p232_p11 = scmp.lt.s32.totalorder %s150_s25, %s150_s25 }
  0x1f   :  { %173 = vmatprep.subr.mxu0 %v47_v1  ;;  %p228_p10 = scmp.ne.s32.totalorder %s150_s25, %s227_s26  ;;  %p233_p12 = scmp.lt.s32.totalorder %s227_s26, %s227_s26 }
  0x20   :  { %174 = vmatpush3.msra.mxu0 %v47_v1 }
  0x21   :  { %175 = vmatprep.subr.mxu0 %v46_v3  ;;  %p234_p13 = por %p233_p12, %p232_p11 }
  0x22   :  { %176 = vmatpush3.msra.mxu0 %v46_v3 }
  0x23   :  { %177 = vmatprep.subr.mxu0 %v45_v4  ;;  %p235_p0 = pnand %p234_p13, %p228_p10 }
  0x24   :  { %178 = vmatpush3.msra.mxu0 %v45_v4 }
  0x25   :  { %180 = vmatmul.mubr.msk.f32.vlgmr.msra.gmra.mxu0 %vm56_vm0, %v44_v5 }
  0xe5   :  { %v181_v7 = vpop.f32.mrf.mxu0 }
  0xe6   :  { %v135_v8 = vadd.f32 %v181_v7, %v162_v6 }
  0xe7   :  { %v129_v9 = vpop.f32.mrf.mxu0 }
  0xe8   :  { %v139_v10 = vmax.f32 %v135_v8, 0.0  ;;  %v130_v11 = vadd.f32 %v162_v6, %v129_v9 }
  0xea   :  { %v141_v12 = vadd.f32 %v139_v10, %v44_v5  ;;  %v138_v13 = vmax.f32 %v130_v11, 0.0 }
  0xec   :  { %143 = vst.msk [vmem:[#allocation7 + $0x8] sm:$0xff] %vm56_vm0, %v141_v12  ;;  %v140_v14 = vadd.f32 %v138_v13, %v43_v2 }
  0xee   :  { %142 = vst.msk [vmem:[#allocation7] sm:$0xff] %vm56_vm0, %v140_v14 }
  0xef   :  { %238 = shalt.err (!%p235_p0)
}
  0xf0   :  { %155 = dma.vmem_to_hbm [thread:$0]  %s150_s25, 256, %s306_s3, [#allocation4], %s254_s15, %s254_s15, %s255_s16  }
  0xf1   :  { %251 = dma.done.wait [#allocation4], 256  }
  0xf2   :  { %252 = vsyncadd [#allocation4], 4294967040 }
  0xf3   :  { %159 = vsyncpa [#allocation3], 1 }
  0xf4   :  { %160 = vsyncpa [#allocation6], 1 }
  0xf5   :  { %161 = vsyncpa [#allocation4], 1 }

</bundles_post_ra>
